<compile_context>
chip_gen: v6e
topology: v6e:2x2x1
jax: 0.10.0
libtpu: 0.0.40
codegen_flags: <defaults>
</compile_context>

<pallas_src>
import jax
import jax.numpy as jnp
from jax.experimental import pallas as pl
from jax.experimental.pallas import tpu as pltpu


_LANE = 128
_MAX_TILE = 8192                 # lanes per HW tile; in bf16, 2*(Cin+Cout)*T*2B stays
                                 # well under the scoped-VMEM budget at CANF widths.
_VMEM_LIMIT = 48 * 1024 * 1024   # <= v7x's 64 MiB physical; > v5e/v6e scoped defaults.
_IO_DTYPE = jnp.bfloat16         # HBM-resident dtype for x / conv weight / output.


def _round_up(n, m):
    return (n + m - 1) // m * m


def cond_layer_kernel(x_ref, wT_ref, s_ref, b_ref, o_ref):
    """One (batch, HW-tile) step.

    x_ref:  (Cin, T)     input pixels for this tile (channels on sublanes), bf16
    wT_ref: (Cout, Cin)  1x1-conv weight, transposed, bf16
    s_ref:  (Cout, 1)    softplus(scale) for this batch, f32
    b_ref:  (Cout, 1)    softplus(scale)*conv_bias + bias for this batch, f32
    o_ref:  (Cout, T)    output tile (lane-dense along HW), bf16
    """
    # m(x): 1x1 conv == channel matmul; f32 accumulation on the MXU.
    y = jnp.dot(wT_ref[...], x_ref[...], preferred_element_type=jnp.float32)
    # modulation (f32), single cast at the store.
    o_ref[...] = (y * s_ref[...] + b_ref[...]).astype(o_ref.dtype)


@jax.jit
def conditional_layer_forward(x_nchw, condition, params):
    """x_nchw: (B, Cin, H, W); condition: (B, conditions)."""
    wconv, bconv, w1, b1, w2s, w2b = params
    B, Cin, H, W = x_nchw.shape
    Cout = wconv.shape[1]
    HW = H * W

    # --- conditional affine MLP, hoisted out of the hot loop (tiny, once per batch, f32) ---
    h = jax.nn.sigmoid(condition.astype(jnp.float32) @ w1.astype(jnp.float32)
                       + b1.astype(jnp.float32))                    # (B, 16)
    s = jax.nn.softplus(h @ w2s.astype(jnp.float32))                 # (B, Cout)
    # Fold the conv bias: (W@x + b_conv)*s + bias == W@x*s + (s*b_conv + bias)
    b_eff = s * bconv.astype(jnp.float32) + h @ w2b.astype(jnp.float32)  # (B, Cout)
    s3 = s[:, :, None]                                               # (B, Cout, 1)
    b3 = b_eff[:, :, None]                                           # (B, Cout, 1)

    # --- channels-on-sublane layout: NCHW -> (B, Cin, HW) is a free reshape; bf16 I/O ---
    x = x_nchw.reshape(B, Cin, HW).astype(_IO_DTYPE)
    wT = jnp.transpose(wconv).astype(_IO_DTYPE)                      # (Cout, Cin)

    # --- balanced lane tiles: pick the tile count first, then the tile (multiple of 128).
    #     No jnp.pad / output slice: the ragged boundary block is handled by Pallas.
    n = max(1, pl.cdiv(HW, _MAX_TILE))
    if B * n < 2 and HW > _LANE:
        n = 2                                # v7x: make sure both TensorCores get work
    T = _round_up(pl.cdiv(HW, n), _LANE)
    n_tiles = pl.cdiv(HW, T)

    out = pl.pallas_call(
        cond_layer_kernel,
        out_shape=jax.ShapeDtypeStruct((B, Cout, HW), _IO_DTYPE),
        grid_spec=pltpu.PrefetchScalarGridSpec(
            num_scalar_prefetch=0,
            grid=(B, n_tiles),
            in_specs=[
                pl.BlockSpec((None, Cin, T), lambda b, j: (b, 0, j)),    # x tile
                pl.BlockSpec((Cout, Cin), lambda b, j: (0, 0)),          # conv weight
                pl.BlockSpec((None, Cout, 1), lambda b, j: (b, 0, 0)),   # softplus(scale)
                pl.BlockSpec((None, Cout, 1), lambda b, j: (b, 0, 0)),   # folded bias
            ],
            out_specs=pl.BlockSpec((None, Cout, T), lambda b, j: (b, 0, j)),
        ),
        compiler_params=pltpu.CompilerParams(
            dimension_semantics=("parallel", "parallel"),
            vmem_limit_bytes=_VMEM_LIMIT),
    )(x, wT, s3, b3)

    # (B, Cout, HW) -> NCHW is a free reshape (no transpose pass).
    return out.reshape(B, Cout, H, W)


def _reference(x_nchw, condition, params):
    """Plain-JAX f32 reference mirroring the PyTorch forward."""
    wconv, bconv, w1, b1, w2s, w2b = params
    y = jnp.einsum('bchw,co->bohw', x_nchw, wconv) + bconv[0][None, :, None, None]
    h = jax.nn.sigmoid(condition @ w1 + b1[0])
    scale = (h @ w2s)[:, :, None, None]
    bias = (h @ w2b)[:, :, None, None]
    return y * jax.nn.softplus(scale) + bias


def _make_case(key, B, Cin, Cout, H, W, conditions):
    k_x, k_c, k_wc, k_bc, k_w1, k_b1, k_w2 = jax.random.split(key, 7)
    x = jax.random.normal(k_x, (B, Cin, H, W), jnp.float32)
    condition = jax.random.normal(k_c, (B, conditions), jnp.float32)
    # Synthetic parameters matching __init__ shapes:
    #   m = Conv2d(Cin, Cout, 1): weight as matmul (Cin, Cout), bias (1, Cout)
    #   affine[0] = Linear(conditions, 16) + Sigmoid + Linear(16, 2*Cout, bias=False)
    wconv = jax.random.normal(k_wc, (Cin, Cout), jnp.float32) * 0.1
    bconv = jax.random.normal(k_bc, (1, Cout), jnp.float32) * 0.1
    w1 = jax.random.normal(k_w1, (conditions, 16), jnp.float32) * 0.5
    b1 = jax.random.normal(k_b1, (1, 16), jnp.float32) * 0.5
    w2 = jax.random.normal(k_w2, (16, 2 * Cout), jnp.float32) * 0.5
    # chunk(2, dim=1) on the (B, 2*Cout) affine output == splitting w2's columns
    w2s, w2b = w2[:, :Cout], w2[:, Cout:]
    return x, condition, (wconv, bconv, w1, b1, w2s, w2b)


if __name__ == "__main__":
    key = jax.random.PRNGKey(0)
    k1, k2 = jax.random.split(key)

    # bf16 I/O tolerance (accumulation / modulation are f32; only inputs and the final
    # store are bf16).
    ATOL = RTOL = 3e-2

    # Case 1: module-scale shapes, 128-aligned HW. batch=2, channels=4, spatial=16, cond=1.
    x, cond, params = _make_case(k1, B=2, Cin=4, Cout=4, H=16, W=16, conditions=1)
    out = jax.block_until_ready(conditional_layer_forward(x, cond, params))
    ref = _reference(x, cond, params)
    assert out.shape == ref.shape
    assert jnp.allclose(out.astype(jnp.float32), ref, atol=ATOL, rtol=RTOL), \
        "mismatch vs reference (aligned case)"

    # Case 2: B=1 with HW not a multiple of 128 -> exercises the ragged boundary block
    # (no jnp.pad / output slice) and the forced >=2-tile split for v7x megacore.
    x, cond, params = _make_case(k2, B=1, Cin=4, Cout=4, H=15, W=15, conditions=1)
    out = jax.block_until_ready(conditional_layer_forward(x, cond, params))
    ref = _reference(x, cond, params)
    assert out.shape == ref.shape
    assert jnp.allclose(out.astype(jnp.float32), ref, atol=ATOL, rtol=RTOL), \
        "mismatch vs reference (ragged case)"

    print("KERNEL_OK")
</pallas_src>

<mosaic_0001>
module attributes {stable_mosaic.version = 11 : i64} {
  func.func @cond_layer_kernel(%arg0: i32, %arg1: i32, %arg2: memref<1x4x256xbf16, #tpu.memory_space<vmem>>, %arg3: memref<4x4xbf16, #tpu.memory_space<vmem>>, %arg4: memref<1x4x1xf32, #tpu.memory_space<vmem>>, %arg5: memref<1x4x1xf32, #tpu.memory_space<vmem>>, %arg6: memref<1x4x256xbf16, #tpu.memory_space<vmem>>) attributes {dimension_semantics = [#tpu.dimension_semantics<parallel>, #tpu.dimension_semantics<parallel>], iteration_bounds = array<i64: 2, 1>, scalar_prefetch = 0 : i64, scratch_operands = 0 : i64, tpu.core_type = #tpu.core_type<tc>, window_params = [{transform_indices = @transform_0, window_bounds = array<i64: 1, 4, 256>}, {pipeline_mode = #tpu.pipeline_mode<synchronous>, transform_indices = @transform_1, window_bounds = array<i64: 4, 4>}, {transform_indices = @transform_2, window_bounds = array<i64: 1, 4, 1>}, {transform_indices = @transform_3, window_bounds = array<i64: 1, 4, 1>}, {transform_indices = @transform_4, window_bounds = array<i64: 1, 4, 256>}]} {
    %c0 = arith.constant 0 : index
    %c0_0 = arith.constant 0 : index
    %0 = vector.load %arg3[%c0, %c0_0] : memref<4x4xbf16, #tpu.memory_space<vmem>>, vector<4x4xbf16>
    %c0_1 = arith.constant 0 : index
    %c0_2 = arith.constant 0 : index
    %c0_3 = arith.constant 0 : index
    %1 = vector.load %arg2[%c0_1, %c0_2, %c0_3] : memref<1x4x256xbf16, #tpu.memory_space<vmem>>, vector<1x4x256xbf16>
    %2 = vector.shape_cast %1 : vector<1x4x256xbf16> to vector<4x256xbf16>
    %cst = arith.constant dense<0.000000e+00> : vector<4x256xf32>
    %3 = tpu.matmul %0, %2, %cst {dimension_numbers = #tpu.dot_dimension_numbers<[1], [0], [0], [1], [0, 0, 1, 1], [], []>} : vector<4x4xbf16>, vector<4x256xbf16>, vector<4x256xf32> -> vector<4x256xf32>
    %c0_4 = arith.constant 0 : index
    %c0_5 = arith.constant 0 : index
    %c0_6 = arith.constant 0 : index
    %4 = vector.load %arg4[%c0_4, %c0_5, %c0_6] : memref<1x4x1xf32, #tpu.memory_space<vmem>>, vector<1x4x1xf32>
    %5 = vector.shape_cast %4 : vector<1x4x1xf32> to vector<4x1xf32>
    %6 = vector.broadcast %5 : vector<4x1xf32> to vector<4x256xf32>
    %7 = arith.mulf %3, %6 : vector<4x256xf32>
    %c0_7 = arith.constant 0 : index
    %c0_8 = arith.constant 0 : index
    %c0_9 = arith.constant 0 : index
    %8 = vector.load %arg5[%c0_7, %c0_8, %c0_9] : memref<1x4x1xf32, #tpu.memory_space<vmem>>, vector<1x4x1xf32>
    %9 = vector.shape_cast %8 : vector<1x4x1xf32> to vector<4x1xf32>
    %10 = vector.broadcast %9 : vector<4x1xf32> to vector<4x256xf32>
    %11 = arith.addf %7, %10 : vector<4x256xf32>
    %12 = arith.truncf %11 : vector<4x256xf32> to vector<4x256xbf16>
    %c0_10 = arith.constant 0 : index
    %c0_11 = arith.constant 0 : index
    %c0_12 = arith.constant 0 : index
    %13 = vector.load %arg6[%c0_10, %c0_11, %c0_12] : memref<1x4x256xbf16, #tpu.memory_space<vmem>>, vector<1x4x256xbf16>
    %14 = vector.shape_cast %13 : vector<1x4x256xbf16> to vector<4x256xbf16>
    %15 = vector.shape_cast %12 : vector<4x256xbf16> to vector<1x4x256xbf16>
    tpu.vector_store %arg6[%c0_10, %c0_11, %c0_12], %15 {strides = array<i32>} : memref<1x4x256xbf16, #tpu.memory_space<vmem>>, vector<1x4x256xbf16>,
    return
  }
  func.func @transform_0(%arg0: i32, %arg1: i32) -> (i32, i32, i32) {
    %c0_i32 = arith.constant 0 : i32
    %c0_i32_0 = arith.constant 0 : i32
    return %arg0, %c0_i32, %arg1 : i32, i32, i32
  }
  func.func @transform_1(%arg0: i32, %arg1: i32) -> (i32, i32) {
    %c0_i32 = arith.constant 0 : i32
    %c0_i32_0 = arith.constant 0 : i32
    %c0_i32_1 = arith.constant 0 : i32
    return %c0_i32, %c0_i32_0 : i32, i32
  }
  func.func @transform_2(%arg0: i32, %arg1: i32) -> (i32, i32, i32) {
    %c0_i32 = arith.constant 0 : i32
    %c0_i32_0 = arith.constant 0 : i32
    %c0_i32_1 = arith.constant 0 : i32
    return %arg0, %c0_i32, %c0_i32_0 : i32, i32, i32
  }
  func.func @transform_3(%arg0: i32, %arg1: i32) -> (i32, i32, i32) {
    %c0_i32 = arith.constant 0 : i32
    %c0_i32_0 = arith.constant 0 : i32
    %c0_i32_1 = arith.constant 0 : i32
    return %arg0, %c0_i32, %c0_i32_0 : i32, i32, i32
  }
  func.func @transform_4(%arg0: i32, %arg1: i32) -> (i32, i32, i32) {
    %c0_i32 = arith.constant 0 : i32
    %c0_i32_0 = arith.constant 0 : i32
    return %arg0, %c0_i32, %arg1 : i32, i32, i32
  }
}

</mosaic_0001>

<bundles_post_ra>
// kernel: conditional_layer_forward.1
= control target key start
LH: loop header
LB: loop body
LE: loop exit
PB: predicated region body
PF: predicated region fallthrough
CT: control target
= control target key end

     0   :  { %s572_s15 = smov 0   ;;  %s574_s16 = smov 0   ;;  %s620_s0 = inlined_call_operand.vmem [shape: bf16[2,4,256], index: 0, kind: input, shape index: {}]   ;;  %s621_s1 = inlined_call_operand.vmem [shape: bf16[4,4], index: 1, kind: input, shape index: {}]   ;;  %s622_s2 = inlined_call_operand.vmem [shape: f32[2,4,1], index: 2, kind: input, shape index: {}]   ;;  %s623_s3 = inlined_call_operand.vmem [shape: f32[2,4,1], index: 3, kind: input, shape index: {}]   ;;  %s624_s4 = inlined_call_operand.vmem [shape: bf16[2,4,256], index: 4, kind: output, shape index: {}]  }
   0x1   :  { %s576_s17 = smov 0  }
   0x2 LB: > { %s26_s18 = sadd.s32 1, %s540_s16  ;;  %p480_p0 = scmp.ge.s32.totalorder %s544_s17, 1  ;;  %s544_s17 = sphi %s576_s17, %s14_s17   ;;  %s540_s16 = sphi %s574_s16, %s626_s16   ;;  %s536_s15 = sphi %s572_s15, %s625_s15  }
   0x3   : > { %p28_p1 = scmp.ge.s32.totalorder %s26_s18, 2  ;;  %p201_p2 = scmp.lt.s32.totalorder %s544_s17, 3 }
   0x5   : > { %s628_s18 = smov (%p28_p1, %s26_s18), 0  ;;  %p202_p3 = pnand %p480_p0, %p201_p2 }
   0x6   : > { %p244_p4 = scmp.lt.s32.totalorder (!%p202_p3), %s536_s15, 1 }
   0x7   : > { %205 = sbr.rel (%p202_p3) target bundleno = 224 (0xe0), region = 36 }
   0xc   : > { %v546_v0 = vmov 0   ;;  %s630_s15 = smov (!%p244_p4, %s536_s15), 1  ;;  %vm287_vm0 = vcmask 1041408   ;;  %v272_v6 = vld [vmem:[%s621_s1] sm:$0x3]  ;;  %vm283_vm1 = vcmask 31744  }
   0xd   : > { %326 = vmatprep.mubr.bf16.mxu0 %v546_v0  ;;  %521 = vset.pattern.permute.xlu0 %v546_v0  ;;  %s590_s19 = sshll.u32 %s630_s15, 2 }
   0xe   : > { %s251_s22 = scalar_lea.vmem %s620_s0, %s590_s19  ;;  %s256_s25 = scalar_lea.vmem %s622_s2, %s590_s19 }
   0xf   : > { %v487_v1 = vld.sshfl [vmem:[%s251_s22] sm:$0x33 pattern:$0x76325410]  ;;  %s260_s28 = scalar_lea.vmem %s623_s3, %s590_s19  ;;  %s269_s7 = scalar_lea.vmem %s624_s4, %s590_s19 }
  0x10   : > { %v335_v2 = vld [vmem:[%s256_s25] sm:$0xf]  ;;  %v282_v3 = vcombine.high %v487_v1, %v487_v1  ;;  %v289_v4 = vsel %vm287_vm0, %v487_v1, 0 }
  0x11   : > { %338 = vperm.xlu0 %521, %v335_v2   ;;  %v343_v5 = vld [vmem:[%s260_s28] sm:$0xf] }
  0x12   : > { %488 = vmatprep.subr.msk.bf16.mxu0 %vm287_vm0, %v282_v3 }
  0x13   : > { %309 = vmatpush1.bf16.msra.mxu0 %v289_v4 }
  0x15   : > { %346 = vperm.xlu0 %521, %v343_v5  }
  0x16   : > { %489 = vmatmul.mubr.msk.bf16.vlgmr.msra.gmra.mxu0 %vm283_vm1, %v272_v6 }
  0x8c   : > { %v339_v7 = vpop.permute.xlu0 %338 }
  0x90   : > { %v347_v12 = vpop.permute.xlu0 %346 }
  0xd6   : > { %v328_v8 = vpop.f32.mrf.mxu0 }
  0xd7   : > { %v341_v9 = vmul.f32 %v339_v7, %v328_v8 }
  0xd8   : > { %v330_v10 = vpop.f32.mrf.mxu0 }
  0xd9   : > { %v342_v11 = vmul.f32 %v339_v7, %v330_v10  ;;  %v349_v14 = vadd.f32 %v347_v12, %v341_v9 }
  0xda   : > { %v332_v13 = vpop.f32.mrf.mxu0 }
  0xdb   : > { %v350_v15 = vadd.f32 %v347_v12, %v342_v11 }
  0xdc   : > { %v333_v16 = vpop.f32.mrf.mxu0 }
  0xdd   : > { %v490_v17 = vpack.c.bf16 %v350_v15, %v349_v14 }
  0xdf   : > { %491 = vst.sshfl [vmem:[%s269_s7] sm:$0x33 pattern:$0x76325410] %v490_v17 }
  0xe0 PF: > { %s14_s17 = sadd.s32 1, %s544_s17   ;;  %s625_s15 = smov %s540_s16 }
  0xe1   : > { %p11_p5 = scmp.ge.s32.totalorder %s14_s17, 4   ;;  %s626_s16 = smov %s628_s18 }
  0xe3   :  { %13 = sbr.rel (!%p11_p5) target bundleno = 2 (0x2), region = 72 }

</bundles_post_ra>
